<compile_context>
chip_gen: v7x
topology: tpu7x:2x2x1
jax: 0.10.0
libtpu: 0.0.40
codegen_flags: <defaults>
</compile_context>

<pallas_src>
import functools

import jax
import jax.numpy as jnp
from jax.experimental import pallas as pl
from jax.experimental.pallas import tpu as pltpu


# ----------------------------------------------------------------------------- kernel
def _bilinear_attn_kernel(qp_ref, v_ref, *rest, has_mask: bool):
    if has_mask:
        mask_ref, pooled_ref, attn_ref = rest
    else:
        pooled_ref, attn_ref = rest

    v = v_ref[...]                                   # (tb, S, V), native dtype
    qp = qp_ref[...].astype(v.dtype)                 # (tb, V)

    # scores[b, s] = <value[b, s, :], q_proj[b, :]>
    # Multiply in the native dtype (packed bf16 VPU on v6e/v7x); accumulate the
    # lane reduction in f32.
    scores = jnp.sum((v * qp[:, None, :]).astype(jnp.float32), axis=-1)   # (tb, S)

    # Softmax over the seq axis with the mask folded in:
    #   attn = (mask * e) / sum(mask * e)  ==  renormalized masked softmax.
    m = jnp.max(scores, axis=-1, keepdims=True)
    e = jnp.exp(scores - m)
    if has_mask:
        e = e * mask_ref[...].astype(jnp.float32)
    denom = jnp.sum(e, axis=-1, keepdims=True)
    attn = e * pl.reciprocal(denom, approx=False)    # exact: attn checked at 1e-5

    # pooled[b, :] = sum_s attn[b, s] * value[b, s, :]   (f32 accumulate)
    pooled = jnp.sum((attn[:, :, None].astype(v.dtype) * v).astype(jnp.float32),
                     axis=1)                                              # (tb, V)

    pooled_ref[...] = pooled.astype(pooled_ref.dtype)
    attn_ref[...] = attn.astype(attn_ref.dtype)


# ----------------------------------------------------------------------------- tiling
def _device_budget():
    """Per-block byte budget for the value slab + a scoped-VMEM cap, by chip gen."""
    try:
        kind = jax.devices()[0].device_kind.lower()
    except Exception:
        kind = ""
    is_v7 = "v7" in kind
    if is_v7:                      # 64 MiB physical VMEM, ~3.2 TB/s HBM
        return 12 << 20, 48 << 20, True
    if "v6" in kind:               # 128 MiB physical, ~1.4 TB/s
        return 8 << 20, 100 << 20, False
    # v5e / unknown: modest blocks; still raise the 16 MiB default scoped limit.
    return 4 << 20, 100 << 20, False


def _pick_batch_tile(B, bytes_per_row, budget, is_v7, override=None):
    """Batch tile: multiple of 8 (sublane) or == B, sized from the byte budget."""
    if override is not None:
        return min(int(override), B)
    rows = max(1, budget // max(bytes_per_row, 1))
    if rows >= B:
        tb = B
        # v7x has 2 TensorCores: make sure the "parallel" grid has >= 2 steps.
        if is_v7 and B >= 16:
            half = ((-(-B // 2)) + 7) // 8 * 8
            if 0 < half < B:
                tb = half
        return tb
    tb = max(8, (rows // 8) * 8)
    return min(tb, B)


# ----------------------------------------------------------------------------- wrapper
def bilinear_attention_forward(query, value, weight, node_mask=None, *,
                               block_batch=None):
    """query: (B, Q), value: (B, S, V), weight: (Q, V) [torch Linear(V, Q).weight],
    node_mask: optional (B, S).  Returns (pooled (B, V), attn (B, S))."""
    B, Qd = query.shape
    Bv, S, Vd = value.shape
    assert B == Bv and weight.shape == (Qd, Vd)
    has_mask = node_mask is not None

    # Hoist the tiny (B, Q) @ (Q, V) projection out of the kernel so the weight
    # never needs a (double-buffered) VMEM allocation.  f32, highest precision.
    q_proj = jnp.dot(query.astype(jnp.float32), weight.astype(jnp.float32),
                     precision=jax.lax.Precision.HIGHEST)          # (B, V) f32

    budget, vmem_cap, is_v7 = _device_budget()
    bytes_per_row = S * Vd * value.dtype.itemsize
    tb = _pick_batch_tile(B, bytes_per_row, budget, is_v7, override=block_batch)

    grid = (pl.cdiv(B, tb),)       # ragged last block handled by Pallas: no jnp.pad

    in_specs = [
        pl.BlockSpec((tb, Vd), lambda i: (i, 0)),         # q_proj tile
        pl.BlockSpec((tb, S, Vd), lambda i: (i, 0, 0)),   # value tile (dominant)
    ]
    args = (q_proj, value)
    if has_mask:
        in_specs.append(pl.BlockSpec((tb, S), lambda i: (i, 0)))
        args = args + (node_mask,)

    out_shape = (
        jax.ShapeDtypeStruct((B, Vd), value.dtype),       # pooled
        jax.ShapeDtypeStruct((B, S), value.dtype),        # attn
    )
    out_specs = (
        pl.BlockSpec((tb, Vd), lambda i: (i, 0)),
        pl.BlockSpec((tb, S), lambda i: (i, 0)),
    )

    # Scoped-VMEM estimate: double-buffered pipeline blocks + in-kernel f32
    # temporaries (mul temp, scores/attn/pooled) + headroom.
    itemsize = value.dtype.itemsize
    blk_in = tb * S * Vd * itemsize + tb * Vd * q_proj.dtype.itemsize
    if has_mask:
        blk_in += tb * S * node_mask.dtype.itemsize
    blk_out = tb * (Vd + S) * itemsize
    needed = 2 * (blk_in + blk_out) + tb * S * Vd * 4 + tb * (2 * S + 2 * Vd) * 4
    vmem_limit = int(min(vmem_cap, max(32 << 20, needed + (2 << 20))))

    kernel = functools.partial(_bilinear_attn_kernel, has_mask=has_mask)

    pooled, attn = pl.pallas_call(
        kernel,
        out_shape=out_shape,
        grid_spec=pltpu.PrefetchScalarGridSpec(
            num_scalar_prefetch=0,
            grid=grid,
            in_specs=in_specs,
            out_specs=out_specs,
        ),
        compiler_params=pltpu.CompilerParams(
            # Batch tiles are fully independent -> shard grid across TensorCores
            # on multi-TC chips (v7x); no-op on single-TC v5e/v6e.
            dimension_semantics=("parallel",),
            vmem_limit_bytes=vmem_limit,
        ),
    )(*args)

    return pooled, attn


# ----------------------------------------------------------------------------- test
if __name__ == "__main__":
    def ref_forward(q, v, w, mask=None):
        scores = jnp.einsum("bsv,qv,bq->bs", v, w, q,
                            precision=jax.lax.Precision.HIGHEST)
        attn = jax.nn.softmax(scores, axis=1)
        if mask is not None:
            attn = attn * mask
            attn = attn / jnp.sum(attn, axis=1, keepdims=True)
        pooled = jnp.einsum("bs,bsv->bv", attn, v,
                            precision=jax.lax.Precision.HIGHEST)
        return pooled, attn

    # ---- small config matching the module's forward ------------------------
    B, S, Qd, Vd = 2, 8, 16, 32
    key = jax.random.PRNGKey(0)
    kq, kv, kw, km = jax.random.split(key, 4)
    query = jax.random.normal(kq, (B, Qd), dtype=jnp.float32)
    value = jax.random.normal(kv, (B, S, Vd), dtype=jnp.float32)
    weight = 0.1 * jax.random.normal(kw, (Qd, Vd), dtype=jnp.float32)  # (Q, V)
    node_mask = (jax.random.uniform(km, (B, S)) > 0.3).astype(jnp.float32)
    node_mask = node_mask.at[:, 0].set(1.0)   # keep at least one node per row

    # unmasked path
    pooled, attn = bilinear_attention_forward(query, value, weight)
    pooled, attn = jax.block_until_ready((pooled, attn))
    pooled_r, attn_r = ref_forward(query, value, weight)
    assert pooled.shape == (B, Vd) and attn.shape == (B, S)
    assert jnp.allclose(pooled, pooled_r, atol=1e-4, rtol=1e-4), "pooled mismatch"
    assert jnp.allclose(attn, attn_r, atol=1e-5, rtol=1e-4), "attn mismatch"

    # masked path
    pooled_m, attn_m = bilinear_attention_forward(query, value, weight, node_mask)
    pooled_m, attn_m = jax.block_until_ready((pooled_m, attn_m))
    pooled_mr, attn_mr = ref_forward(query, value, weight, node_mask)
    assert jnp.allclose(pooled_m, pooled_mr, atol=1e-4, rtol=1e-4), "masked pooled mismatch"
    assert jnp.allclose(attn_m, attn_mr, atol=1e-5, rtol=1e-4), "masked attn mismatch"

    # ragged batch path (B not a multiple of the batch tile; no wrapper padding)
    B2 = 20
    kq2, kv2, km2 = jax.random.split(jax.random.PRNGKey(1), 3)
    query2 = jax.random.normal(kq2, (B2, Qd), dtype=jnp.float32)
    value2 = jax.random.normal(kv2, (B2, S, Vd), dtype=jnp.float32)
    mask2 = (jax.random.uniform(km2, (B2, S)) > 0.3).astype(jnp.float32)
    mask2 = mask2.at[:, 0].set(1.0)
    pooled2, attn2 = bilinear_attention_forward(query2, value2, weight, mask2,
                                                block_batch=8)
    pooled2, attn2 = jax.block_until_ready((pooled2, attn2))
    pooled2_r, attn2_r = ref_forward(query2, value2, weight, mask2)
    assert pooled2.shape == (B2, Vd) and attn2.shape == (B2, S)
    assert jnp.allclose(pooled2, pooled2_r, atol=1e-4, rtol=1e-4), "ragged pooled mismatch"
    assert jnp.allclose(attn2, attn2_r, atol=1e-5, rtol=1e-4), "ragged attn mismatch"

    print("KERNEL_OK")
</pallas_src>

<mosaic_0001>
module attributes {stable_mosaic.version = 11 : i64} {
  func.func @_bilinear_attn_kernel(%arg0: i32, %arg1: memref<2x32xf32, #tpu.memory_space<vmem>>, %arg2: memref<2x8x32xf32, #tpu.memory_space<vmem>>, %arg3: memref<2x32xf32, #tpu.memory_space<vmem>>, %arg4: memref<2x8xf32, #tpu.memory_space<vmem>>) attributes {dimension_semantics = [#tpu.dimension_semantics<parallel>], iteration_bounds = array<i64: 1>, scalar_prefetch = 0 : i64, scratch_operands = 0 : i64, tpu.core_type = #tpu.core_type<tc>, window_params = [{transform_indices = @transform_0, window_bounds = array<i64: 2, 32>}, {transform_indices = @transform_1, window_bounds = array<i64: 2, 8, 32>}, {transform_indices = @transform_2, window_bounds = array<i64: 2, 32>}, {transform_indices = @transform_3, window_bounds = array<i64: 2, 8>}]} {
    %c0 = arith.constant 0 : index
    %c0_0 = arith.constant 0 : index
    %c0_1 = arith.constant 0 : index
    %0 = vector.load %arg2[%c0, %c0_0, %c0_1] : memref<2x8x32xf32, #tpu.memory_space<vmem>>, vector<2x8x32xf32>
    %c0_2 = arith.constant 0 : index
    %c0_3 = arith.constant 0 : index
    %1 = vector.load %arg1[%c0_2, %c0_3] : memref<2x32xf32, #tpu.memory_space<vmem>>, vector<2x32xf32>
    %2 = vector.shape_cast %1 : vector<2x32xf32> to vector<2x1x32xf32>
    %3 = vector.broadcast %2 : vector<2x1x32xf32> to vector<2x8x32xf32>
    %4 = arith.mulf %0, %3 : vector<2x8x32xf32>
    %cst = arith.constant dense<0.000000e+00> : vector<2x8xf32>
    %5 = vector.multi_reduction <add>, %4, %cst [2] : vector<2x8x32xf32> to vector<2x8xf32>
    %cst_4 = arith.constant dense<0xFF800000> : vector<2xf32>
    %6 = vector.multi_reduction <maximumf>, %5, %cst_4 [1] : vector<2x8xf32> to vector<2xf32>
    %7 = vector.shape_cast %6 : vector<2xf32> to vector<2x1xf32>
    %8 = vector.broadcast %7 : vector<2x1xf32> to vector<2x8xf32>
    %9 = arith.subf %5, %8 : vector<2x8xf32>
    %10 = math.exp %9 : vector<2x8xf32>
    %cst_5 = arith.constant dense<0.000000e+00> : vector<2xf32>
    %11 = vector.multi_reduction <add>, %10, %cst_5 [1] : vector<2x8xf32> to vector<2xf32>
    %12 = vector.shape_cast %11 : vector<2xf32> to vector<2x1xf32>
    %13 = tpu.reciprocal %12 : vector<2x1xf32> -> vector<2x1xf32>
    %14 = vector.broadcast %13 : vector<2x1xf32> to vector<2x8xf32>
    %15 = arith.mulf %10, %14 : vector<2x8xf32>
    %16 = vector.shape_cast %15 : vector<2x8xf32> to vector<2x8x1xf32>
    %17 = vector.broadcast %16 : vector<2x8x1xf32> to vector<2x8x32xf32>
    %18 = arith.mulf %17, %0 : vector<2x8x32xf32>
    %cst_6 = arith.constant dense<0.000000e+00> : vector<2x32xf32>
    %19 = vector.multi_reduction <add>, %18, %cst_6 [1] : vector<2x8x32xf32> to vector<2x32xf32>
    %c0_7 = arith.constant 0 : index
    %c0_8 = arith.constant 0 : index
    %20 = vector.load %arg3[%c0_7, %c0_8] : memref<2x32xf32, #tpu.memory_space<vmem>>, vector<2x32xf32>
    tpu.vector_store %arg3[%c0_7, %c0_8], %19 {strides = array<i32>} : memref<2x32xf32, #tpu.memory_space<vmem>>, vector<2x32xf32>,
    %c0_9 = arith.constant 0 : index
    %c0_10 = arith.constant 0 : index
    %21 = vector.load %arg4[%c0_9, %c0_10] : memref<2x8xf32, #tpu.memory_space<vmem>>, vector<2x8xf32>
    tpu.vector_store %arg4[%c0_9, %c0_10], %15 {strides = array<i32>} : memref<2x8xf32, #tpu.memory_space<vmem>>, vector<2x8xf32>,
    return
  }
  func.func @transform_0(%arg0: i32) -> (i32, i32) {
    %c0_i32 = arith.constant 0 : i32
    %c0_i32_0 = arith.constant 0 : i32
    return %arg0, %c0_i32 : i32, i32
  }
  func.func @transform_1(%arg0: i32) -> (i32, i32, i32) {
    %c0_i32 = arith.constant 0 : i32
    %c0_i32_0 = arith.constant 0 : i32
    %c0_i32_1 = arith.constant 0 : i32
    return %arg0, %c0_i32, %c0_i32_0 : i32, i32, i32
  }
  func.func @transform_2(%arg0: i32) -> (i32, i32) {
    %c0_i32 = arith.constant 0 : i32
    %c0_i32_0 = arith.constant 0 : i32
    return %arg0, %c0_i32 : i32, i32
  }
  func.func @transform_3(%arg0: i32) -> (i32, i32) {
    %c0_i32 = arith.constant 0 : i32
    %c0_i32_0 = arith.constant 0 : i32
    return %arg0, %c0_i32 : i32, i32
  }
}

</mosaic_0001>

<bundles_post_ra>
// kernel: tpu_custom_call.1
= control target key start
LH: loop header
LB: loop body
LE: loop exit
PB: predicated region body
PF: predicated region fallthrough
CT: control target
= control target key end

     0   :  { %9 = vsyncpa [#allocation3], 0  ;;  %s445_s0 = inlined_call_operand.hbm [shape: f32[2,32], index: 0, kind: input, shape index: {}]   ;;  %s446_s1 = inlined_call_operand.hbm [shape: f32[2,8,32], index: 1, kind: input, shape index: {}]   ;;  %s447_s2 = inlined_call_operand.hbm [shape: f32[2,32], index: 2, kind: output, shape index: {0}]   ;;  %s448_s3 = inlined_call_operand.hbm [shape: f32[2,8], index: 3, kind: output, shape index: {1}]  }
   0x1   :  { %10 = vsyncpa [#allocation6], 0 }
   0x2   :  { %11 = vsyncpa [#allocation4], 0 }
   0x3   :  { %12 = vsyncpa [#allocation9], 0  ;;  %s343_s12 = smov [#allocation2]   ;;  %s344_s14 = smov [#allocation5]  }
   0x4   :  { %s19_s13 = sshll.u32 %s343_s12, 4  ;;  %s28_s15 = sshll.u32 %s344_s14, 4  ;;  %s20_s13 = int_to_ptr.vmem [resolvable:$true] %s19_s13  ;;  %s371_s15 = int_to_ptr.vmem [resolvable:$true] %s28_s15 }
   0x5   :  { %s247_s18 = scalar_lea.hbm %s445_s0, 32 }
   0x6   :  { %p248_p0 = scmp.ne.s32.totalorder %s445_s0, %s247_s18  ;;  %p251_p1 = scmp.lt.u32.totalorder %s247_s18, %s445_s0 }
   0x8   :  { %p253_p2 = pnand %p251_p1, %p248_p0 }
   0xa   :  { %256 = shalt.err (!%p253_p2)
}
   0xb   :  { %s257_s23 = scalar_lea.vmem %s20_s13, 32  ;;  %p262_p4 = scmp.lt.s32.totalorder %s20_s13, %s20_s13 }
   0xc   :  { %p258_p3 = scmp.ne.s32.totalorder %s20_s13, %s257_s23  ;;  %p263_p5 = scmp.lt.s32.totalorder %s257_s23, %s257_s23 }
   0xe   :  { %p264_p6 = por %p263_p5, %p262_p4 }
  0x10   :  { %p265_p7 = pnand %p264_p6, %p258_p3 }
  0x12   :  { %268 = shalt.err (!%p265_p7)
}
  0x13   :  { %22 = dma.hbm_to_vmem [thread:$0]  %s445_s0, 32, %s20_s13, [#allocation3]  }
  0x14   :  { %s269_s28 = scalar_lea.hbm %s446_s1, 256 }
  0x15   :  { %p270_p8 = scmp.ne.s32.totalorder %s446_s1, %s269_s28  ;;  %p273_p9 = scmp.lt.u32.totalorder %s269_s28, %s446_s1 }
  0x17   :  { %p275_p10 = pnand %p273_p9, %p270_p8 }
  0x19   :  { %278 = shalt.err (!%p275_p10)
}
  0x1a   :  { %s279_s6 = scalar_lea.vmem %s371_s15, 256  ;;  %p284_p12 = scmp.lt.s32.totalorder %s371_s15, %s371_s15 }
  0x1b   :  { %p280_p11 = scmp.ne.s32.totalorder %s371_s15, %s279_s6  ;;  %p285_p13 = scmp.lt.s32.totalorder %s279_s6, %s279_s6 }
  0x1d   :  { %p286_p0 = por %p285_p13, %p284_p12 }
  0x1f   :  { %p287_p1 = pnand %p286_p0, %p280_p11 }
  0x21   :  { %290 = shalt.err (!%p287_p1)
}
  0x22   :  { %s345_s0 = smov 128   ;;  %s346_s7 = smov 8  }
  0x23   :  { %34 = dma.hbm_to_vmem [thread:$0]  %s446_s1, 256, %s371_s15, [#allocation6], %s345_s0, %s345_s0, %s346_s7  }
  0x24   :  { %335 = dma.done.wait [#allocation3], 32  }
  0x25   :  { %336 = vsyncadd [#allocation3], 4294967264 }
  0x26   :  { %337 = dma.done.wait [#allocation6], 256  }
  0x27   :  { %338 = vsyncadd [#allocation6], 4294967040  ;;  %v56_v0 = vlaneseq  ;;  %v347_v1 = vmov 1966171168   ;;  %v41_v12 = vld [vmem:[#allocation5] sm:$0xff]  ;;  %vm79_vm0 = vcmask 261120  }
  0x28   :  { %v54_v2 = vunpack.c.l.s4 %v347_v1  ;;  %v230_v9 = vld.sshfl [vmem:[#allocation2] sm:$0x11 pattern:$0x75316420]  ;;  %v42_v15 = vld [vmem:[#allocation5 + $0x8] sm:$0xff]  ;;  %vm98_vm1 = vcmask 1041409  }
  0x29   :  { %v57_v3 = vshrl.u32 %v56_v0, 7  ;;  %v89_v4 = vand.u32 127, %v56_v0  ;;  %v52_v10 = vcombine.high %v230_v9, %v230_v9  ;;  %vm101_vm2 = vcmask 58368   ;;  %s349_s1 = smov [#allocation8]  }
  0x2a   :  { %v55_v5 = vunpack.c.0.s8 %v54_v2  ;;  %v348_v27 = vmov 0   ;;  %s216_s10 = sshll.u32 %s349_s1, 4  ;;  %s217_s10 = int_to_ptr.vmem [resolvable:$true] %s216_s10 }
  0x2b   :  { %v402_v6 = vsub.s32 %v89_v4, %v57_v3  ;;  %v69_v8 = vsub.s32 0, %v57_v3  ;;  %240 = vset.pattern.permute.xlu0 %v348_v27  ;;  %239 = vset.pattern.permute.xlu1 %v348_v27  ;;  %v112_v28 = vsub.s32 1, %v57_v3  ;;  %s291_s11 = scalar_lea.vmem %s217_s10, 32  ;;  %p296_p3 = scmp.lt.s32.totalorder %s217_s10, %s217_s10 }
  0x2c   :  { %v58_v7 = vsub.s32 %v55_v5, %v57_v3  ;;  %p292_p2 = scmp.ne.s32.totalorder %s217_s10, %s291_s11  ;;  %p297_p4 = scmp.lt.s32.totalorder %s291_s11, %s291_s11 }
  0x2e   :  { %v59_v11 = vrot.slane %v230_v9, %v58_v7  ;;  %v66_v14 = vrot.slane %v52_v10, %v58_v7  ;;  %p298_p5 = por %p297_p4, %p296_p3 }
  0x30   :  { %v70_v13 = vrot.slane %v59_v11, %v69_v8  ;;  %v74_v17 = vrot.slane %v66_v14, %v69_v8  ;;  %p299_p6 = pnand %p298_p5, %p292_p2 }
  0x32   :  { %v77_v16 = vmul.f32 %v70_v13, %v41_v12  ;;  %v78_v19 = vmul.f32 %v74_v17, %v42_v15 }
  0x34   :  { %v80_v18 = vsel %vm79_vm0, %v77_v16, 0.0  ;;  %v83_v20 = vsel %vm79_vm0, %v78_v19, 0.0 }
  0x35   :  { %81 = vadd.xlane.f32.xlu0 %v80_v18 }
  0x39   :  { %84 = vadd.xlane.f32.xlu0 %v83_v20 }
  0xc2   :  { %v82_v21 = vpop.xlane.xlu0 %81 }
  0xc3   :  { %v93_v23 = vrot.slane %v82_v21, %v402_v6 }
  0xc6   :  { %v85_v22 = vpop.xlane.xlu0 %84 }
  0xc7   :  { %v97_v24 = vrot.slane %v85_v22, %v402_v6 }
  0xc9   :  { %v99_v25 = vsel %vm98_vm1, %v97_v24, %v93_v23 }
  0xca   :  { %v102_v26 = vsel %vm101_vm2, %v99_v25, -inf }
  0xcb   :  { %103 = vmax.xlane.f32.xlu1 %v102_v26 }
 0x158   :  { %v104_v29 = vpop.xlane.xlu1 %103 }
 0x159   :  { %v109_v30 = vrot.slane %v104_v29, %v69_v8  ;;  %v113_v31 = vrot.slane %v104_v29, %v112_v28 }
 0x15b   :  { %v116_v32 = vsub.f32 %v82_v21, %v109_v30  ;;  %v117_v33 = vsub.f32 %v85_v22, %v113_v31 }
 0x15d   :  { %v118_v34 = vmul.f32 1.442695, %v116_v32  ;;  %v120_v35 = vmul.f32 1.442695, %v117_v33 }
 0x15f   :  { %241 = vpow2.f32 %v118_v34 }
 0x160   :  { %243 = vpow2.f32 %v120_v35 }
 0x169   :  { %v242_v36 = vpop.eup %241 }
 0x16a   :  { %v244_v37 = vpop.eup %243  ;;  %125 = vperm.xlu1 %239, %v242_v36  }
 0x16b   :  { %128 = vperm.xlu0 %240, %v244_v37  }
 0x1e9   :  { %v126_v38 = vpop.permute.xlu1 %125 }
 0x1ea   :  { %v129_v39 = vpop.permute.xlu0 %128  ;;  %v133_v40 = vrot.slane %v126_v38, %v402_v6 }
 0x1eb   :  { %v137_v41 = vrot.slane %v129_v39, %v402_v6 }
 0x1ed   :  { %v138_v42 = vsel %vm98_vm1, %v137_v41, %v133_v40 }
 0x1ee   :  { %v140_v43 = vsel %vm101_vm2, %v138_v42, 0.0 }
 0x1ef   :  { %141 = vadd.xlane.f32.xlu1 %v140_v43 }
 0x27c   :  { %v142_v44 = vpop.xlane.xlu1 %141 }
 0x27d   :  { %245 = vrcp.f32 %v142_v44 }
 0x287   :  { %v246_v45 = vpop.eup %245 }
 0x288   :  { %v148_v46 = vrot.slane %v246_v45, %v69_v8  ;;  %v152_v48 = vrot.slane %v246_v45, %v112_v28 }
 0x28a   :  { %v155_v47 = vmul.f32 %v242_v36, %v148_v46  ;;  %v156_v49 = vmul.f32 %v244_v37, %v152_v48 }
 0x28c   :  { %159 = vperm.xlu0 %240, %v155_v47  }
 0x290   :  { %164 = vperm.xlu0 %240, %v156_v49  }
 0x30b   :  { %v160_v50 = vpop.permute.xlu0 %159 }
 0x30c   :  { %v167_v51 = vmul.f32 %v160_v50, %v41_v12  ;;  %v192_v55 = vrot.slane %v160_v50, %v402_v6 }
 0x30e   :  { %v169_v52 = vsel %vm79_vm0, %v167_v51, 0.0 }
 0x30f   :  { %v170_v53 = vrot.slane %v169_v52, 4  ;;  %v165_v54 = vpop.permute.xlu0 %164 }
 0x310   :  { %v168_v56 = vmul.f32 %v165_v54, %v42_v15  ;;  %v196_v57 = vrot.slane %v165_v54, %v402_v6 }
 0x311   :  { %v171_v58 = vadd.f32 %v170_v53, %v169_v52 }
 0x312   :  { %v176_v59 = vsel %vm79_vm0, %v168_v56, 0.0  ;;  %v197_v60 = vsel %vm98_vm1, %v196_v57, %v192_v55 }
 0x313   :  { %v172_v61 = vrot.slane %v171_v58, 2  ;;  %v177_v62 = vrot.slane %v176_v59, 4  ;;  %199 = vst.msk [vmem:[#allocation8] sm:$0x3] %vm101_vm2, %v197_v60 }
 0x314   :  { %302 = shalt.err (!%p299_p6)
}
 0x315   :  { %s303_s14 = scalar_lea.hbm %s448_s3, 32 }
 0x316   :  { %p304_p7 = scmp.ne.s32.totalorder %s448_s3, %s303_s14  ;;  %p307_p8 = scmp.lt.u32.totalorder %s303_s14, %s448_s3 }
 0x318   :  { %p309_p9 = pnand %p307_p8, %p304_p7 }
 0x31a   :  { %312 = shalt.err (!%p309_p9)
}
 0x31b   :  { %219 = dma.vmem_to_hbm [thread:$0]  %s217_s10, 32, %s448_s3, [#allocation9]   ;;  %v173_v63 = vadd.f32 %v172_v61, %v171_v58  ;;  %v178_v0 = vadd.f32 %v177_v62, %v176_v59  ;;  %vm187_vm3 = vcmask 254976  }
 0x31c   :  { %s350_s21 = smov [#allocation7]  }
 0x31d   :  { %v179_v1 = vrot.slane %v178_v0, 2  ;;  %v174_v2 = vrot.slane %v173_v63, 1  ;;  %s206_s22 = sshll.u32 %s350_s21, 4  ;;  %s207_s22 = int_to_ptr.vmem [resolvable:$true] %s206_s22 }
 0x31e   :  { %s313_s23 = scalar_lea.vmem %s207_s22, 32  ;;  %p318_p11 = scmp.lt.s32.totalorder %s207_s22, %s207_s22 }
 0x31f   :  { %v180_v3 = vadd.f32 %v179_v1, %v178_v0  ;;  %v175_v6 = vadd.f32 %v174_v2, %v173_v63  ;;  %p314_p10 = scmp.ne.s32.totalorder %s207_s22, %s313_s23  ;;  %p319_p12 = scmp.lt.s32.totalorder %s313_s23, %s313_s23 }
 0x321   :  { %v181_v4 = vrot.slane %v180_v3, 1  ;;  %p320_p13 = por %p319_p12, %p318_p11 }
 0x323   :  { %v182_v5 = vadd.f32 %v181_v4, %v180_v3  ;;  %p321_p0 = pnand %p320_p13, %p314_p10 }
 0x325   :  { %v185_v7 = vsel %vm98_vm1, %v182_v5, %v175_v6 }
 0x326   :  { %188 = vst.msk [vmem:[#allocation7] sm:$0x3] %vm187_vm3, %v185_v7 }
 0x327   :  { %324 = shalt.err (!%p321_p0)
}
 0x328   :  { %s325_s25 = scalar_lea.hbm %s447_s2, 32 }
 0x329   :  { %p326_p1 = scmp.ne.s32.totalorder %s447_s2, %s325_s25  ;;  %p329_p2 = scmp.lt.u32.totalorder %s325_s25, %s447_s2 }
 0x32b   :  { %p331_p3 = pnand %p329_p2, %p326_p1 }
 0x32d   :  { %334 = shalt.err (!%p331_p3)
}
 0x32e   :  { %209 = dma.vmem_to_hbm [thread:$0]  %s207_s22, 32, %s447_s2, [#allocation4]  }
 0x32f   :  { %339 = dma.done.wait [#allocation4], 32  }
 0x330   :  { %340 = vsyncadd [#allocation4], 4294967264 }
 0x331   :  { %341 = dma.done.wait [#allocation9], 32  }
 0x332   :  { %342 = vsyncadd [#allocation9], 4294967264 }
 0x333   :  { %226 = vsyncpa [#allocation3], 1 }
 0x334   :  { %227 = vsyncpa [#allocation6], 1 }
 0x335   :  { %228 = vsyncpa [#allocation4], 1 }
 0x336   :  { %229 = vsyncpa [#allocation9], 1 }

</bundles_post_ra>
